<compile_context>
chip_gen: v5e
topology: v5e:2x2
jax: 0.10.0
libtpu: 0.0.40
codegen_flags: <defaults>
</compile_context>

<pallas_src>
import jax
import jax.numpy as jnp
from jax.experimental import pallas as pl
from jax.experimental.pallas import tpu as pltpu


def _hsig_math(x, out_dtype):
    """relu6(x + 3) / 6 computed in f32, cast to out_dtype."""
    xf = x.astype(jnp.float32)
    return (jnp.clip(xf + 3.0, 0.0, 6.0) * (1.0 / 6.0)).astype(out_dtype)


def _h_sigmoid_kernel(x_ref, o_ref):
    o_ref[...] = _hsig_math(x_ref[...], o_ref.dtype)


_LANE_CANDIDATES = (2048, 1024, 512, 256, 128)


def _pick_layout(total: int, sublane: int):
    """(cols, rows) for a lane-dense 2D view of a 128-aligned flat length."""
    divisible = [c for c in _LANE_CANDIDATES if total % c == 0]  # 128 always divides
    # Prefer the widest cols whose row count is sublane-aligned (unmasked stores,
    # full vregs) ...
    for c in divisible:
        r = total // c
        if r >= sublane and r % sublane == 0:
            return c, r
    # ... else the widest cols that still fills >= 8 sublanes ...
    for c in divisible:
        r = total // c
        if r >= 8:
            return c, r
    # ... else whatever divides (tiny tensors; single full block is legal).
    c = divisible[0]
    return c, total // c


def _vmem_plan():
    """(target_block_bytes, vmem_limit_bytes), generation aware.

    Double-buffered footprint ~= 4 x block_bytes (2 bufs x (in + out)).
      v7x-class (64 MiB VMEM/TC): 4 MiB blocks, 40 MiB scoped limit.
      v5e/v6e   (128 MiB VMEM):   8 MiB blocks, 64 MiB scoped limit.
    """
    try:
        cap = pltpu.get_tpu_info().vmem_capacity_bytes
    except Exception:
        cap = None
    if cap is not None and cap > (64 << 20):
        return 8 << 20, 64 << 20
    return 4 << 20, 40 << 20  # safe on every listed generation


def _pick_row_tile(rows: int, cols: int, itemsize: int, sublane: int,
                   target_bytes: int) -> int:
    """Byte-driven row tile; the cdiv grid masks the (rare) partial last block."""
    row_bytes = cols * itemsize
    tr = max(sublane, (target_bytes // row_bytes) // sublane * sublane)
    if tr >= rows:
        return rows  # one full block (block_shape == full dims is always legal)
    if pl.cdiv(rows, tr) < 4 and rows >= 4 * sublane:
        # 2-3 steps never reach pipeline steady state; aim for ~4 steps.
        tr = max(sublane, ((pl.cdiv(rows, 4) + sublane - 1) // sublane) * sublane)
    return tr


def _run_kernel(flat: jax.Array, dtype) -> jax.Array:
    """Run the Pallas kernel on a flat, 128-aligned-length array."""
    total = flat.shape[0]
    itemsize = jnp.dtype(dtype).itemsize
    sublane = max(8, 32 // itemsize)  # packed sublanes/vreg: f32=8, bf16=16, i8=32
    cols, rows = _pick_layout(total, sublane)
    x2d = flat.reshape(rows, cols)

    target_bytes, vmem_limit = _vmem_plan()
    tr = _pick_row_tile(rows, cols, itemsize, sublane, target_bytes)
    grid = (pl.cdiv(rows, tr),)

    # TODO(synk): verify the "parallel" axis actually shards across v7x's two
    # TensorCores; if not, switch this axis to pltpu.CORE_PARALLEL.
    out2d = pl.pallas_call(
        _h_sigmoid_kernel,
        out_shape=jax.ShapeDtypeStruct((rows, cols), dtype),
        grid_spec=pltpu.PrefetchScalarGridSpec(
            num_scalar_prefetch=0,
            grid=grid,
            in_specs=[pl.BlockSpec((tr, cols), lambda i: (i, 0))],
            out_specs=pl.BlockSpec((tr, cols), lambda i: (i, 0)),
        ),
        compiler_params=pltpu.CompilerParams(
            dimension_semantics=("parallel",),
            vmem_limit_bytes=vmem_limit,
        ),
    )(x2d)
    return out2d.reshape(-1)


def h_sigmoid(x: jax.Array) -> jax.Array:
    """h_sigmoid(x) = relu6(x + 3) / 6, elementwise; any shape/dtype."""
    orig_shape, orig_dtype = x.shape, x.dtype
    total = x.size
    if total == 0:
        return x

    flat = x.reshape(-1)
    body = (total // 128) * 128  # lane-dense portion handled by the kernel
    tail = total - body

    if body == 0:  # tiny (<128 elems): no kernel needed
        return _hsig_math(flat, orig_dtype).reshape(orig_shape)

    if tail == 0:  # hot path: whole tensor through the kernel
        out_flat = _run_kernel(flat, orig_dtype)
    else:
        # Rare ragged path: kernel on the 128-aligned body, plain jnp on the
        # tiny tail (cheaper than a full-tensor pad + slice round trip).
        out_body = _run_kernel(flat[:body], orig_dtype)
        out_tail = _hsig_math(flat[body:], orig_dtype)
        out_flat = jnp.concatenate([out_body, out_tail])
    return out_flat.reshape(orig_shape)


def h_sigmoid_ref(x: jax.Array) -> jax.Array:
    """Pure-JAX reference matching PyTorch: relu6(x + 3) / 6."""
    return _hsig_math(x, x.dtype)


if __name__ == "__main__":
    key = jax.random.PRNGKey(0)
    k1, k2, k3 = jax.random.split(key, 3)

    # NCHW activation, f32 (hot path: element count is a multiple of 128).
    x = jax.random.normal(k1, (2, 4, 16, 16), dtype=jnp.float32) * 4.0
    out = jax.block_until_ready(h_sigmoid(x))
    ref = h_sigmoid_ref(x)
    assert out.shape == x.shape and out.dtype == x.dtype
    assert jnp.allclose(out, ref, atol=1e-6, rtol=1e-6), "f32 mismatch vs reference"

    # bf16 path (kernel computes in f32 then casts, matching the reference).
    xb = (jax.random.normal(k2, (2, 4, 16, 16), dtype=jnp.float32) * 4.0
          ).astype(jnp.bfloat16)
    outb = jax.block_until_ready(h_sigmoid(xb))
    assert outb.dtype == jnp.bfloat16
    assert jnp.allclose(outb.astype(jnp.float32),
                        h_sigmoid_ref(xb).astype(jnp.float32)), "bf16 mismatch"

    # Ragged (non-multiple-of-128) path: kernel body + jnp tail.
    xr = jax.random.normal(k3, (2, 4, 130), dtype=jnp.float32) * 4.0
    outr = jax.block_until_ready(h_sigmoid(xr))
    assert jnp.allclose(outr, h_sigmoid_ref(xr), atol=1e-6, rtol=1e-6), "ragged mismatch"

    print("KERNEL_OK")
</pallas_src>

<mosaic_0001>
module attributes {stable_mosaic.version = 11 : i64} {
  func.func @_h_sigmoid_kernel(%arg0: i32, %arg1: memref<8x256xf32, #tpu.memory_space<vmem>>, %arg2: memref<8x256xf32, #tpu.memory_space<vmem>>) attributes {dimension_semantics = [#tpu.dimension_semantics<parallel>], iteration_bounds = array<i64: 1>, scalar_prefetch = 0 : i64, scratch_operands = 0 : i64, tpu.core_type = #tpu.core_type<tc>, window_params = [{transform_indices = @transform_0, window_bounds = array<i64: 8, 256>}, {transform_indices = @transform_1, window_bounds = array<i64: 8, 256>}]} {
    %c0 = arith.constant 0 : index
    %c0_0 = arith.constant 0 : index
    %0 = vector.load %arg1[%c0, %c0_0] : memref<8x256xf32, #tpu.memory_space<vmem>>, vector<8x256xf32>
    %cst = arith.constant 3.000000e+00 : f32
    %1 = vector.broadcast %cst : f32 to vector<8x256xf32>
    %2 = arith.addf %0, %1 : vector<8x256xf32>
    %cst_1 = arith.constant 0.000000e+00 : f32
    %cst_2 = arith.constant 6.000000e+00 : f32
    %3 = vector.broadcast %cst_1 : f32 to vector<8x256xf32>
    %4 = arith.maximumf %3, %2 : vector<8x256xf32>
    %5 = vector.broadcast %cst_2 : f32 to vector<8x256xf32>
    %6 = arith.minimumf %5, %4 : vector<8x256xf32>
    %cst_3 = arith.constant 0.166666672 : f32
    %7 = vector.broadcast %cst_3 : f32 to vector<8x256xf32>
    %8 = arith.mulf %6, %7 : vector<8x256xf32>
    %c0_4 = arith.constant 0 : index
    %c0_5 = arith.constant 0 : index
    %9 = vector.load %arg2[%c0_4, %c0_5] : memref<8x256xf32, #tpu.memory_space<vmem>>, vector<8x256xf32>
    tpu.vector_store %arg2[%c0_4, %c0_5], %8 {strides = array<i32>} : memref<8x256xf32, #tpu.memory_space<vmem>>, vector<8x256xf32>,
    return
  }
  func.func @transform_0(%arg0: i32) -> (i32, i32) {
    %c0_i32 = arith.constant 0 : i32
    %c0_i32_0 = arith.constant 0 : i32
    return %arg0, %c0_i32 : i32, i32
  }
  func.func @transform_1(%arg0: i32) -> (i32, i32) {
    %c0_i32 = arith.constant 0 : i32
    %c0_i32_0 = arith.constant 0 : i32
    return %arg0, %c0_i32 : i32, i32
  }
}

</mosaic_0001>

<bundles_post_ra>
// kernel: tpu_custom_call.1
= control target key start
LH: loop header
LB: loop body
LE: loop exit
PB: predicated region body
PF: predicated region fallthrough
CT: control target
= control target key end

     0   :  { %6 = vsyncpa [#allocation3], 0  ;;  %s124_s0 = inlined_call_operand.hbm [shape: f32[8,256], index: 0, kind: input, shape index: {}]   ;;  %s125_s1 = inlined_call_operand.hbm [shape: f32[8,256], index: 1, kind: output, shape index: {}]  }
   0x1   :  { %7 = vsyncpa [#allocation4], 0  ;;  %s13_s8 = sshll.u32 %s124_s0, 4  ;;  %s106_s9 = smov [#allocation2]   ;;  %s14_s8 = int_to_ptr.hbm [resolvable:$true] %s13_s8 }
   0x2   :  { %s15_s10 = sshll.u32 %s106_s9, 4  ;;  %s16_s10 = int_to_ptr.vmem [resolvable:$true] %s15_s10 }
   0x3   :  { %18 = dma.hbm_to_vmem [thread:$0]  %s14_s8, 256, %s16_s10, [#allocation3]  }
   0x4   :  { %102 = dma.done.wait [#allocation3], 256  }
   0x5   :  { %103 = vsyncadd [#allocation3], 4294967040  ;;  %v23_v0 = vld [vmem:[#allocation2] sm:$0xff]  ;;  %v24_v1 = vld [vmem:[#allocation2 + $0x8] sm:$0xff]  ;;  %s107_s11 = smov [#allocation5]   ;;  %s42_s0 = sshll.u32 %s125_s1, 4  ;;  %s43_s0 = int_to_ptr.hbm [resolvable:$true] %s42_s0 }
   0x6   :  { %v25_v2 = vadd.f32 3.0, %v23_v0  ;;  %v26_v3 = vadd.f32 3.0, %v24_v1  ;;  %s40_s12 = sshll.u32 %s107_s11, 4  ;;  %s41_s12 = int_to_ptr.vmem [resolvable:$true] %s40_s12 }
   0x8   :  { %v27_v4 = vmax.f32 %v25_v2, 0.0  ;;  %v28_v5 = vmax.f32 %v26_v3, 0.0 }
   0xa   :  { %v29_v6 = vmin.f32 %v27_v4, 6.0  ;;  %v30_v7 = vmin.f32 %v28_v5, 6.0 }
   0xc   :  { %v31_v8 = vmul.f32 0.16666667, %v29_v6  ;;  %v32_v9 = vmul.f32 0.16666667, %v30_v7 }
   0xe   :  { %33 = vst [vmem:[#allocation5] sm:$0xff] %v31_v8 }
   0xf   :  { %34 = vst [vmem:[#allocation5 + $0x8] sm:$0xff] %v32_v9 }
  0x10   :  { %45 = dma.vmem_to_hbm [thread:$0]  %s41_s12, 256, %s43_s0, [#allocation4]  }
  0x11   :  { %104 = dma.done.wait [#allocation4], 256  }
  0x12   :  { %105 = vsyncadd [#allocation4], 4294967040 }
  0x13   :  { %50 = vsyncpa [#allocation3], 1 }
  0x14   :  { %51 = vsyncpa [#allocation4], 1 }

</bundles_post_ra>
